<compile_context>
chip_gen: v6e
topology: v6e:2x2x1
jax: 0.10.0
libtpu: 0.0.40
codegen_flags: <defaults>
</compile_context>

<pallas_src>
import functools

import jax
import jax.numpy as jnp
from jax.experimental import pallas as pl
from jax.experimental.pallas import tpu as pltpu

HID = 128          # padded hidden width (lane-dense)
N_LAYERS = 5


def _round_up(x, m):
    return -(-x // m) * m


def _mlp_kernel(x_ref, w_ref, b_ref, o_ref, *, xp):
    """Fused 5-layer MLP on one batch tile.

    x_ref: (TILE_B, xp)              bf16   (xdim zero-padded to xp)
    w_ref: (xp + 4*HID, HID)         bf16   stacked transposed, zero-padded weights
    b_ref: (8, HID)                  f32    rows 0..4 are the (padded) biases
    o_ref: (TILE_B, HID)             f32    column 0 holds the real output
    """
    offs = [0, xp, xp + HID, xp + 2 * HID, xp + 3 * HID]
    sizes = [xp, HID, HID, HID, HID]

    h = x_ref[...]                                   # bf16 activations
    for layer in range(N_LAYERS):
        w = w_ref[offs[layer]:offs[layer] + sizes[layer], :]   # static slice: free
        y = jnp.dot(h, w, preferred_element_type=jnp.float32)  # MXU, f32 accum
        y = y + b_ref[layer:layer + 1, :]                      # f32 bias row
        if layer < N_LAYERS - 1:
            y = jnp.where(y > 0, y, 0.2 * y)                   # leaky_relu in f32
            h = y.astype(jnp.bfloat16)                         # bf16 back onto MXU
        else:
            o_ref[...] = y


def init_dense_critic_params(key, xdim, layer_dim, dtype=jnp.float32):
    """nn.Linear-style init; weights stored transposed as (in_features, out_features)."""
    dims = [(xdim, layer_dim),
            (layer_dim, layer_dim),
            (layer_dim, layer_dim),
            (layer_dim, layer_dim),
            (layer_dim, 1)]
    params = []
    for fan_in, fan_out in dims:
        key, kw, kb = jax.random.split(key, 3)
        bound = 1.0 / (fan_in ** 0.5)
        w = jax.random.uniform(kw, (fan_in, fan_out), dtype, minval=-bound, maxval=bound)
        b = jax.random.uniform(kb, (1, fan_out), dtype, minval=-bound, maxval=bound)
        params.append((w, b))
    return params


def pack_dense_critic_params(params, xdim, layer_dim):
    """Pack the 10 parameter arrays into one bf16 weight slab + one f32 bias slab."""
    del layer_dim  # implied by the shapes; everything is padded to HID
    xp = max(HID, _round_up(xdim, 128))

    def pad_w(w, rows):
        out = jnp.zeros((rows, HID), jnp.bfloat16)
        return out.at[:w.shape[0], :w.shape[1]].set(w.astype(jnp.bfloat16))

    def pad_b(b):
        out = jnp.zeros((HID,), jnp.float32)
        return out.at[:b.shape[-1]].set(jnp.reshape(b, (-1,)).astype(jnp.float32))

    (w0, b0), (w1, b1), (w2, b2), (w3, b3), (w4, b4) = params
    w_slab = jnp.concatenate(
        [pad_w(w0, xp), pad_w(w1, HID), pad_w(w2, HID), pad_w(w3, HID), pad_w(w4, HID)],
        axis=0)                                                  # (xp + 4*HID, HID) bf16
    bias_rows = [pad_b(b0), pad_b(b1), pad_b(b2), pad_b(b3), pad_b(b4)]
    bias_rows += [jnp.zeros((HID,), jnp.float32)] * 3            # pad sublanes to 8
    b_slab = jnp.stack(bias_rows, axis=0)                        # (8, HID) f32
    return w_slab, b_slab, xp


def _pick_tile_b():
    """Generation-aware batch tile: smaller on v7x (64 MiB VMEM), larger on v5e/v6e."""
    try:
        info = pltpu.get_tpu_info()
        vmem = int(getattr(info, "vmem_capacity_bytes", 128 << 20))
    except Exception:
        vmem = 128 << 20
    return 2048 if vmem >= (96 << 20) else 1024


def dense_critic_forward(X, w_slab, b_slab, xdim, xp):
    """Pallas implementation of DenseCritic.forward. Returns (B, 1) float32."""
    x2d = jnp.reshape(X, (-1, xdim))
    B = x2d.shape[0]

    tile_target = _pick_tile_b()
    if B <= tile_target:
        tile_b = max(8, _round_up(B, 8))
    else:
        tile_b = tile_target
    b_pad = _round_up(B, tile_b)
    grid_b = b_pad // tile_b

    # Pad batch rows and input lanes; cast to bf16 for the MXU.
    x_padded = jnp.zeros((b_pad, xp), jnp.bfloat16)
    x_padded = x_padded.at[:B, :xdim].set(x2d.astype(jnp.bfloat16))

    kernel = functools.partial(_mlp_kernel, xp=xp)
    out_padded = pl.pallas_call(
        kernel,
        out_shape=jax.ShapeDtypeStruct((b_pad, HID), jnp.float32),
        grid_spec=pltpu.PrefetchScalarGridSpec(
            num_scalar_prefetch=0,
            grid=(grid_b,),
            in_specs=[
                # batch tile: pipelined / double-buffered across the grid
                pl.BlockSpec((tile_b, xp), lambda i: (i, 0)),
                # weight slab + bias slab: constant index_map -> VMEM-resident
                pl.BlockSpec((xp + 4 * HID, HID), lambda i: (0, 0)),
                pl.BlockSpec((8, HID), lambda i: (0, 0)),
            ],
            out_specs=pl.BlockSpec((tile_b, HID), lambda i: (i, 0)),
        ),
        compiler_params=pltpu.CompilerParams(
            dimension_semantics=("parallel",),          # shard tiles across TCs on v7x
            vmem_limit_bytes=32 * 1024 * 1024,
        ),
    )(x_padded, w_slab, b_slab)

    # Only column 0 of the lane-dense output is real; padded rows are dropped.
    return out_padded[:B, :1]


def _reference_forward(X, params, xdim):
    """Pure-JAX reference mirroring the kernel numerics (bf16 weights, f32 accum)."""
    h = jnp.reshape(X, (-1, xdim)).astype(jnp.float32)
    n = len(params)
    for i, (w, b) in enumerate(params):
        h = jnp.dot(h.astype(jnp.bfloat16), w.astype(jnp.bfloat16),
                    preferred_element_type=jnp.float32)
        h = h + jnp.reshape(b, (1, -1)).astype(jnp.float32)
        if i < n - 1:
            h = jnp.where(h > 0, h, 0.2 * h)
    return jnp.reshape(h, (-1, 1))


if __name__ == "__main__":
    # Module hyper-params (small demo): xdim = 4*16 = 64, layer_dim = 32.
    xdim = 64
    layer_dim = 32

    key = jax.random.PRNGKey(0)
    kx, kp = jax.random.split(key)
    # Input with extra leading dims, exactly like the torch module handles:
    # forward() flattens to (-1, xdim) -> (2, 64).
    X = jax.random.normal(kx, (2, 4, 16), dtype=jnp.float32)

    params = init_dense_critic_params(kp, xdim, layer_dim)
    w_slab, b_slab, xp = pack_dense_critic_params(params, xdim, layer_dim)

    out = dense_critic_forward(X, w_slab, b_slab, xdim, xp)
    out = jax.block_until_ready(out)

    ref = _reference_forward(X, params, xdim)
    assert out.shape == (2, 1), out.shape
    assert jnp.allclose(out, ref, atol=1e-3, rtol=1e-3), (out, ref)

    print("KERNEL_OK")
</pallas_src>

<mosaic_0001>
module attributes {stable_mosaic.version = 11 : i64} {
  func.func @_mlp_kernel(%arg0: i32, %arg1: memref<8x128xbf16, #tpu.memory_space<vmem>>, %arg2: memref<640x128xbf16, #tpu.memory_space<vmem>>, %arg3: memref<8x128xf32, #tpu.memory_space<vmem>>, %arg4: memref<8x128xf32, #tpu.memory_space<vmem>>) attributes {dimension_semantics = [#tpu.dimension_semantics<parallel>], iteration_bounds = array<i64: 1>, scalar_prefetch = 0 : i64, scratch_operands = 0 : i64, tpu.core_type = #tpu.core_type<tc>, window_params = [{transform_indices = @transform_0, window_bounds = array<i64: 8, 128>}, {pipeline_mode = #tpu.pipeline_mode<synchronous>, transform_indices = @transform_1, window_bounds = array<i64: 640, 128>}, {pipeline_mode = #tpu.pipeline_mode<synchronous>, transform_indices = @transform_2, window_bounds = array<i64: 8, 128>}, {transform_indices = @transform_3, window_bounds = array<i64: 8, 128>}]} {
    %c0 = arith.constant 0 : index
    %c0_0 = arith.constant 0 : index
    %0 = vector.load %arg1[%c0, %c0_0] : memref<8x128xbf16, #tpu.memory_space<vmem>>, vector<8x128xbf16>
    %c0_1 = arith.constant 0 : index
    %c0_2 = arith.constant 0 : index
    %1 = vector.load %arg2[%c0_1, %c0_2] : memref<640x128xbf16, #tpu.memory_space<vmem>>, vector<128x128xbf16>
    %cst = arith.constant dense<0.000000e+00> : vector<8x128xf32>
    %2 = tpu.matmul %0, %1, %cst {dimension_numbers = #tpu.dot_dimension_numbers<[1], [0], [0], [1], [0, 0, 1, 1], [], []>} : vector<8x128xbf16>, vector<128x128xbf16>, vector<8x128xf32> -> vector<8x128xf32>
    %c0_3 = arith.constant 0 : index
    %c0_4 = arith.constant 0 : index
    %3 = vector.load %arg3[%c0_3, %c0_4] : memref<8x128xf32, #tpu.memory_space<vmem>>, vector<1x128xf32>
    %4 = vector.broadcast %3 : vector<1x128xf32> to vector<8x128xf32>
    %5 = arith.addf %2, %4 : vector<8x128xf32>
    %cst_5 = arith.constant 0.000000e+00 : f32
    %6 = vector.broadcast %cst_5 : f32 to vector<8x128xf32>
    %7 = arith.cmpf ogt, %5, %6 : vector<8x128xf32>
    %cst_6 = arith.constant 2.000000e-01 : f32
    %8 = vector.broadcast %cst_6 : f32 to vector<8x128xf32>
    %9 = arith.mulf %8, %5 : vector<8x128xf32>
    %10 = arith.select %7, %5, %9 : vector<8x128xi1>, vector<8x128xf32>
    %11 = arith.truncf %10 : vector<8x128xf32> to vector<8x128xbf16>
    %c128 = arith.constant 128 : index
    %c0_7 = arith.constant 0 : index
    %12 = vector.load %arg2[%c128, %c0_7] : memref<640x128xbf16, #tpu.memory_space<vmem>>, vector<128x128xbf16>
    %cst_8 = arith.constant dense<0.000000e+00> : vector<8x128xf32>
    %13 = tpu.matmul %11, %12, %cst_8 {dimension_numbers = #tpu.dot_dimension_numbers<[1], [0], [0], [1], [0, 0, 1, 1], [], []>} : vector<8x128xbf16>, vector<128x128xbf16>, vector<8x128xf32> -> vector<8x128xf32>
    %c1 = arith.constant 1 : index
    %c0_9 = arith.constant 0 : index
    %14 = vector.load %arg3[%c1, %c0_9] : memref<8x128xf32, #tpu.memory_space<vmem>>, vector<1x128xf32>
    %15 = vector.broadcast %14 : vector<1x128xf32> to vector<8x128xf32>
    %16 = arith.addf %13, %15 : vector<8x128xf32>
    %cst_10 = arith.constant 0.000000e+00 : f32
    %17 = vector.broadcast %cst_10 : f32 to vector<8x128xf32>
    %18 = arith.cmpf ogt, %16, %17 : vector<8x128xf32>
    %cst_11 = arith.constant 2.000000e-01 : f32
    %19 = vector.broadcast %cst_11 : f32 to vector<8x128xf32>
    %20 = arith.mulf %19, %16 : vector<8x128xf32>
    %21 = arith.select %18, %16, %20 : vector<8x128xi1>, vector<8x128xf32>
    %22 = arith.truncf %21 : vector<8x128xf32> to vector<8x128xbf16>
    %c256 = arith.constant 256 : index
    %c0_12 = arith.constant 0 : index
    %23 = vector.load %arg2[%c256, %c0_12] : memref<640x128xbf16, #tpu.memory_space<vmem>>, vector<128x128xbf16>
    %cst_13 = arith.constant dense<0.000000e+00> : vector<8x128xf32>
    %24 = tpu.matmul %22, %23, %cst_13 {dimension_numbers = #tpu.dot_dimension_numbers<[1], [0], [0], [1], [0, 0, 1, 1], [], []>} : vector<8x128xbf16>, vector<128x128xbf16>, vector<8x128xf32> -> vector<8x128xf32>
    %c2 = arith.constant 2 : index
    %c0_14 = arith.constant 0 : index
    %25 = vector.load %arg3[%c2, %c0_14] : memref<8x128xf32, #tpu.memory_space<vmem>>, vector<1x128xf32>
    %26 = vector.broadcast %25 : vector<1x128xf32> to vector<8x128xf32>
    %27 = arith.addf %24, %26 : vector<8x128xf32>
    %cst_15 = arith.constant 0.000000e+00 : f32
    %28 = vector.broadcast %cst_15 : f32 to vector<8x128xf32>
    %29 = arith.cmpf ogt, %27, %28 : vector<8x128xf32>
    %cst_16 = arith.constant 2.000000e-01 : f32
    %30 = vector.broadcast %cst_16 : f32 to vector<8x128xf32>
    %31 = arith.mulf %30, %27 : vector<8x128xf32>
    %32 = arith.select %29, %27, %31 : vector<8x128xi1>, vector<8x128xf32>
    %33 = arith.truncf %32 : vector<8x128xf32> to vector<8x128xbf16>
    %c384 = arith.constant 384 : index
    %c0_17 = arith.constant 0 : index
    %34 = vector.load %arg2[%c384, %c0_17] : memref<640x128xbf16, #tpu.memory_space<vmem>>, vector<128x128xbf16>
    %cst_18 = arith.constant dense<0.000000e+00> : vector<8x128xf32>
    %35 = tpu.matmul %33, %34, %cst_18 {dimension_numbers = #tpu.dot_dimension_numbers<[1], [0], [0], [1], [0, 0, 1, 1], [], []>} : vector<8x128xbf16>, vector<128x128xbf16>, vector<8x128xf32> -> vector<8x128xf32>
    %c3 = arith.constant 3 : index
    %c0_19 = arith.constant 0 : index
    %36 = vector.load %arg3[%c3, %c0_19] : memref<8x128xf32, #tpu.memory_space<vmem>>, vector<1x128xf32>
    %37 = vector.broadcast %36 : vector<1x128xf32> to vector<8x128xf32>
    %38 = arith.addf %35, %37 : vector<8x128xf32>
    %cst_20 = arith.constant 0.000000e+00 : f32
    %39 = vector.broadcast %cst_20 : f32 to vector<8x128xf32>
    %40 = arith.cmpf ogt, %38, %39 : vector<8x128xf32>
    %cst_21 = arith.constant 2.000000e-01 : f32
    %41 = vector.broadcast %cst_21 : f32 to vector<8x128xf32>
    %42 = arith.mulf %41, %38 : vector<8x128xf32>
    %43 = arith.select %40, %38, %42 : vector<8x128xi1>, vector<8x128xf32>
    %44 = arith.truncf %43 : vector<8x128xf32> to vector<8x128xbf16>
    %c512 = arith.constant 512 : index
    %c0_22 = arith.constant 0 : index
    %45 = vector.load %arg2[%c512, %c0_22] : memref<640x128xbf16, #tpu.memory_space<vmem>>, vector<128x128xbf16>
    %cst_23 = arith.constant dense<0.000000e+00> : vector<8x128xf32>
    %46 = tpu.matmul %44, %45, %cst_23 {dimension_numbers = #tpu.dot_dimension_numbers<[1], [0], [0], [1], [0, 0, 1, 1], [], []>} : vector<8x128xbf16>, vector<128x128xbf16>, vector<8x128xf32> -> vector<8x128xf32>
    %c4 = arith.constant 4 : index
    %c0_24 = arith.constant 0 : index
    %47 = vector.load %arg3[%c4, %c0_24] : memref<8x128xf32, #tpu.memory_space<vmem>>, vector<1x128xf32>
    %48 = vector.broadcast %47 : vector<1x128xf32> to vector<8x128xf32>
    %49 = arith.addf %46, %48 : vector<8x128xf32>
    %c0_25 = arith.constant 0 : index
    %c0_26 = arith.constant 0 : index
    %50 = vector.load %arg4[%c0_25, %c0_26] : memref<8x128xf32, #tpu.memory_space<vmem>>, vector<8x128xf32>
    tpu.vector_store %arg4[%c0_25, %c0_26], %49 {strides = array<i32>} : memref<8x128xf32, #tpu.memory_space<vmem>>, vector<8x128xf32>,
    return
  }
  func.func @transform_0(%arg0: i32) -> (i32, i32) {
    %c0_i32 = arith.constant 0 : i32
    %c0_i32_0 = arith.constant 0 : i32
    return %arg0, %c0_i32 : i32, i32
  }
  func.func @transform_1(%arg0: i32) -> (i32, i32) {
    %c0_i32 = arith.constant 0 : i32
    %c0_i32_0 = arith.constant 0 : i32
    %c0_i32_1 = arith.constant 0 : i32
    return %c0_i32, %c0_i32_0 : i32, i32
  }
  func.func @transform_2(%arg0: i32) -> (i32, i32) {
    %c0_i32 = arith.constant 0 : i32
    %c0_i32_0 = arith.constant 0 : i32
    %c0_i32_1 = arith.constant 0 : i32
    return %c0_i32, %c0_i32_0 : i32, i32
  }
  func.func @transform_3(%arg0: i32) -> (i32, i32) {
    %c0_i32 = arith.constant 0 : i32
    %c0_i32_0 = arith.constant 0 : i32
    return %arg0, %c0_i32 : i32, i32
  }
}

</mosaic_0001>

<bundles_post_ra>
// kernel: tpu_custom_call.1
= control target key start
LH: loop header
LB: loop body
LE: loop exit
PB: predicated region body
PF: predicated region fallthrough
CT: control target
= control target key end

     0   :  { %8 = vsyncpa [#allocation3], 0  ;;  %s1046_s0 = inlined_call_operand.hbm [shape: bf16[8,128], index: 0, kind: input, shape index: {}]   ;;  %s1047_s1 = inlined_call_operand.hbm [shape: bf16[640,128], index: 1, kind: input, shape index: {}]   ;;  %s1048_s2 = inlined_call_operand.hbm [shape: f32[8,128], index: 2, kind: input, shape index: {}]   ;;  %s1049_s3 = inlined_call_operand.hbm [shape: f32[8,128], index: 3, kind: output, shape index: {}]  }
   0x1   :  { %9 = vsyncpa [#allocation6], 0 }
   0x2   :  { %10 = vsyncpa [#allocation4], 0  ;;  %s956_s12 = smov [#allocation5]  }
   0x3   :  { %s26_s13 = sshll.u32 %s956_s12, 4  ;;  %s27_s13 = int_to_ptr.vmem [resolvable:$true] %s26_s13 }
   0x4   :  { %s878_s14 = scalar_lea.vmem %s27_s13, 5120  ;;  %p883_p1 = scmp.lt.s32.totalorder %s27_s13, %s27_s13 }
   0x5   :  { %p879_p0 = scmp.ne.s32.totalorder %s27_s13, %s878_s14  ;;  %p884_p2 = scmp.lt.s32.totalorder %s878_s14, %s878_s14 }
   0x7   :  { %p885_p3 = por %p884_p2, %p883_p1 }
   0x9   :  { %p886_p4 = pnand %p885_p3, %p879_p0 }
   0xb   :  { %889 = shalt.err (!%p886_p4)
}
   0xc   :  { %s957_s15 = smov 64   ;;  %s958_s16 = smov 4  }
   0xd   :  { %32 = dma.hbm_to_vmem [thread:$0]  %s1047_s1, 5120, %s27_s13, [#allocation6], %s957_s15, %s957_s15, %s958_s16  }
   0xe   :  { %s959_s19 = smov [#allocation2]   ;;  %s960_s21 = smov [#allocation7]  }
   0xf   :  { %s17_s20 = sshll.u32 %s959_s19, 4  ;;  %s39_s22 = sshll.u32 %s960_s21, 4  ;;  %s18_s20 = int_to_ptr.vmem [resolvable:$true] %s17_s20  ;;  %s40_s22 = int_to_ptr.vmem [resolvable:$true] %s39_s22 }
  0x10   :  { %s898_s23 = scalar_lea.vmem %s18_s20, 64  ;;  %p903_p6 = scmp.lt.s32.totalorder %s18_s20, %s18_s20 }
  0x11   :  { %p899_p5 = scmp.ne.s32.totalorder %s18_s20, %s898_s23  ;;  %p904_p7 = scmp.lt.s32.totalorder %s898_s23, %s898_s23 }
  0x13   :  { %p905_p8 = por %p904_p7, %p903_p6 }
  0x15   :  { %p906_p9 = pnand %p905_p8, %p899_p5 }
  0x17   :  { %909 = shalt.err (!%p906_p9)
}
  0x18   :  { %20 = dma.hbm_to_vmem [thread:$0]  %s1046_s0, 64, %s18_s20, [#allocation3]  }
  0x19   :  { %s918_s26 = scalar_lea.vmem %s40_s22, 128  ;;  %p923_p11 = scmp.lt.s32.totalorder %s40_s22, %s40_s22 }
  0x1a   :  { %p919_p10 = scmp.ne.s32.totalorder %s40_s22, %s918_s26  ;;  %p924_p12 = scmp.lt.s32.totalorder %s918_s26, %s918_s26 }
  0x1c   :  { %p925_p13 = por %p924_p12, %p923_p11 }
  0x1e   :  { %p926_p0 = pnand %p925_p13, %p919_p10 }
  0x20   :  { %929 = shalt.err (!%p926_p0)
}
  0x21   :  { %42 = dma.hbm_to_vmem [thread:$0]  %s1048_s2, 128, %s40_s22, [#allocation6]  }
  0x22   :  { %950 = dma.done.wait [#allocation3], 64  }
  0x23   :  { %951 = vsyncadd [#allocation3], 4294967232 }
  0x24   :  { %952 = dma.done.wait [#allocation6], 5248  }
  0x25   :  { %953 = vsyncadd [#allocation6], 4294962048  ;;  %v961_v0 = vmov 0.0   ;;  %vm962_vm0 = vmmov 0   ;;  %v830_v1 = vld [vmem:[#allocation5 + $0x38] sm:$0xff]   ;;  %v831_v2 = vld [vmem:[#allocation5 + $0x30] sm:$0xff]  }
  0x26   :  { %722 = vmatprep.subr.bf16.mxu0 %v961_v0  ;;  %738 = vmatprep.mubr.msk.bf16.mxu0 %vm962_vm0, %v961_v0  ;;  %v832_v3 = vld [vmem:[#allocation5 + $0x28] sm:$0xff]   ;;  %v838_v4 = vld [vmem:[#allocation5 + $0x78] sm:$0xff]   ;;  %v833_v5 = vld [vmem:[#allocation5 + $0x20] sm:$0xff]   ;;  %s963_s0 = smov [#allocation8]  }
  0x27   :  { %742 = vmatprep.subr.bf16.mxu1 %v961_v0  ;;  %758 = vmatprep.mubr.msk.bf16.mxu1 %vm962_vm0, %v961_v0  ;;  %v839_v6 = vld [vmem:[#allocation5 + $0x70] sm:$0xff]   ;;  %v834_v7 = vld [vmem:[#allocation5 + $0x18] sm:$0xff]   ;;  %v840_v8 = vld [vmem:[#allocation5 + $0x68] sm:$0xff]   ;;  %s622_s2 = sshll.u32 %s963_s0, 4  ;;  %s623_s2 = int_to_ptr.vmem [resolvable:$true] %s622_s2 }
  0x28   :  { %723 = vmatpush3.bf16.msra.mxu0 %v830_v1  ;;  %743 = vmatpush3.bf16.msra.mxu1 %v838_v4  ;;  %v835_v9 = vld [vmem:[#allocation5 + $0x10] sm:$0xff]   ;;  %v841_v10 = vld [vmem:[#allocation5 + $0x60] sm:$0xff]   ;;  %v836_v11 = vld [vmem:[#allocation5 + $0x8] sm:$0xff]   ;;  %s930_s28 = scalar_lea.vmem %s623_s2, 128  ;;  %p935_p2 = scmp.lt.s32.totalorder %s623_s2, %s623_s2 }
  0x29   :  { %724 = vmatprep.subr.bf16.mxu0 %v961_v0  ;;  %744 = vmatprep.subr.bf16.mxu1 %v961_v0  ;;  %v842_v12 = vld [vmem:[#allocation5 + $0x58] sm:$0xff]   ;;  %v837_v13 = vld [vmem:[#allocation5] sm:$0xff]   ;;  %v843_v14 = vld [vmem:[#allocation5 + $0x50] sm:$0xff]   ;;  %p931_p1 = scmp.ne.s32.totalorder %s623_s2, %s930_s28  ;;  %p936_p3 = scmp.lt.s32.totalorder %s930_s28, %s930_s28 }
  0x2a   :  { %v53_v15 = vld [vmem:[#allocation2] sm:$0xf]  ;;  %v844_v16 = vld [vmem:[#allocation5 + $0x48] sm:$0xff]   ;;  %v845_v17 = vld [vmem:[#allocation5 + $0x40] sm:$0xff]  }
  0x2b   :  { %v846_v18 = vld [vmem:[#allocation5 + $0xb8] sm:$0xff]   ;;  %v847_v19 = vld [vmem:[#allocation5 + $0xb0] sm:$0xff]   ;;  %v848_v20 = vld [vmem:[#allocation5 + $0xa8] sm:$0xff]   ;;  %p937_p4 = por %p936_p3, %p935_p2 }
  0x2c   :  { %725 = vmatpush3.bf16.msra.mxu0 %v831_v2  ;;  %745 = vmatpush3.bf16.msra.mxu1 %v839_v6  ;;  %v849_v21 = vld [vmem:[#allocation5 + $0xa0] sm:$0xff]   ;;  %v850_v22 = vld [vmem:[#allocation5 + $0x98] sm:$0xff]   ;;  %v851_v23 = vld [vmem:[#allocation5 + $0x90] sm:$0xff]  }
  0x2d   :  { %726 = vmatprep.subr.bf16.mxu0 %v961_v0  ;;  %746 = vmatprep.subr.bf16.mxu1 %v961_v0  ;;  %v632_v24 = vld [vmem:[#allocation7] ss:$0 sm:$0xff]  ;;  %v852_v33 = vld [vmem:[#allocation5 + $0x88] sm:$0xff]   ;;  %v854_v35 = vld [vmem:[#allocation5 + $0xf8] sm:$0xff]   ;;  %p938_p5 = pnand %p937_p4, %p931_p1 }
  0x2e   :  { %v853_v34 = vld [vmem:[#allocation5 + $0x80] sm:$0xff]   ;;  %v855_v36 = vld [vmem:[#allocation5 + $0xf0] sm:$0xff]   ;;  %v856_v37 = vld [vmem:[#allocation5 + $0xe8] sm:$0xff]  }
  0x2f   :  { %v857_v38 = vld [vmem:[#allocation5 + $0xe0] sm:$0xff]   ;;  %v858_v39 = vld [vmem:[#allocation5 + $0xd8] sm:$0xff]   ;;  %v859_v40 = vld [vmem:[#allocation5 + $0xd0] sm:$0xff]  }
  0x30   :  { %727 = vmatpush3.bf16.msra.mxu0 %v832_v3  ;;  %747 = vmatpush3.bf16.msra.mxu1 %v840_v8  ;;  %v641_v41 = vld [vmem:[#allocation7 + $0x1] ss:$0 sm:$0xff]  ;;  %v860_v50 = vld [vmem:[#allocation5 + $0xc8] sm:$0xff]   ;;  %v862_v52 = vld [vmem:[#allocation5 + $0x138] sm:$0xff]  }
  0x31   :  { %728 = vmatprep.subr.bf16.mxu0 %v961_v0  ;;  %748 = vmatprep.subr.bf16.mxu1 %v961_v0  ;;  %v861_v51 = vld [vmem:[#allocation5 + $0xc0] sm:$0xff]   ;;  %v863_v53 = vld [vmem:[#allocation5 + $0x130] sm:$0xff]   ;;  %v864_v54 = vld [vmem:[#allocation5 + $0x128] sm:$0xff]  }
  0x32   :  { %v865_v55 = vld [vmem:[#allocation5 + $0x120] sm:$0xff]   ;;  %v866_v56 = vld [vmem:[#allocation5 + $0x118] sm:$0xff]   ;;  %v867_v57 = vld [vmem:[#allocation5 + $0x110] sm:$0xff]  }
  0x33   :  { %v650_v58 = vld [vmem:[#allocation7 + $0x2] ss:$0 sm:$0xff]  ;;  %v868_v4 = vld [vmem:[#allocation5 + $0x108] sm:$0xff]   ;;  %v659_v6 = vld [vmem:[#allocation7 + $0x3] ss:$0 sm:$0xff] }
  0x34   :  { %729 = vmatpush3.bf16.msra.mxu0 %v833_v5  ;;  %749 = vmatpush3.bf16.msra.mxu1 %v841_v10  ;;  %v869_v5 = vld [vmem:[#allocation5 + $0x100] sm:$0xff]  }
  0x35   :  { %730 = vmatprep.subr.bf16.mxu0 %v961_v0  ;;  %750 = vmatprep.subr.bf16.mxu1 %v961_v0 }
  0x38   :  { %731 = vmatpush3.bf16.msra.mxu0 %v834_v7  ;;  %751 = vmatpush3.bf16.msra.mxu1 %v842_v12 }
  0x39   :  { %732 = vmatprep.subr.bf16.mxu0 %v961_v0  ;;  %752 = vmatprep.subr.bf16.mxu1 %v961_v0 }
  0x3c   :  { %733 = vmatpush3.bf16.msra.mxu0 %v835_v9  ;;  %753 = vmatpush3.bf16.msra.mxu1 %v843_v14 }
  0x3d   :  { %734 = vmatprep.subr.bf16.mxu0 %v961_v0  ;;  %754 = vmatprep.subr.bf16.mxu1 %v961_v0 }
  0x40   :  { %735 = vmatpush3.bf16.msra.mxu0 %v836_v11  ;;  %755 = vmatpush3.bf16.msra.mxu1 %v844_v16 }
  0x41   :  { %736 = vmatprep.subr.bf16.mxu0 %v961_v0  ;;  %756 = vmatprep.subr.bf16.mxu1 %v961_v0 }
  0x44   :  { %737 = vmatpush3.bf16.msra.mxu0 %v837_v13  ;;  %757 = vmatpush3.bf16.msra.mxu1 %v845_v17 }
  0x45   :  { %762 = vmatprep.subr.bf16.mxu0 %v961_v0  ;;  %782 = vmatprep.subr.bf16.mxu1 %v961_v0 }
  0x47   :  { %739 = vmatmul.mubr.bf16.vlgmr.msra.gmra.mxu0 %v53_v15  ;;  %v668_v15 = vld [vmem:[#allocation7 + $0x4] ss:$0 sm:$0xff] }
  0x48   :  { %778 = vmatprep.mubr.msk.bf16.mxu0 %vm962_vm0, %v961_v0  ;;  %763 = vmatpush3.bf16.msra.mxu0 %v846_v18 }
  0x49   :  { %764 = vmatprep.subr.bf16.mxu0 %v961_v0 }
  0x4c   :  { %765 = vmatpush3.bf16.msra.mxu0 %v847_v19 }
  0x4d   :  { %766 = vmatprep.subr.bf16.mxu0 %v961_v0 }
  0x50   :  { %767 = vmatpush3.bf16.msra.mxu0 %v848_v20 }
  0x51   :  { %768 = vmatprep.subr.bf16.mxu0 %v961_v0 }
  0x54   :  { %769 = vmatpush3.bf16.msra.mxu0 %v849_v21 }
  0x55   :  { %770 = vmatprep.subr.bf16.mxu0 %v961_v0 }
  0x58   :  { %771 = vmatpush3.bf16.msra.mxu0 %v850_v22 }
  0x59   :  { %772 = vmatprep.subr.bf16.mxu0 %v961_v0 }
  0x5c   :  { %773 = vmatpush3.bf16.msra.mxu0 %v851_v23 }
  0x5d   :  { %774 = vmatprep.subr.bf16.mxu0 %v961_v0 }
  0x60   :  { %775 = vmatpush3.bf16.msra.mxu0 %v852_v33 }
  0x61   :  { %776 = vmatprep.subr.bf16.mxu0 %v961_v0 }
  0x64   :  { %777 = vmatpush3.bf16.msra.mxu0 %v853_v34 }
  0x65   :  { %802 = vmatprep.subr.bf16.mxu0 %v961_v0 }
 0x107   :  { %v157_v25 = vpop.f32.mrf.mxu0 }
 0x108   :  { %v158_v26 = vadd.f32 %v632_v24, %v157_v25 }
 0x109   :  { %v740_v27 = vpop.f32.mrf.mxu0 }
 0x10a   :  { %vm163_vm1 = vcmp.gt.f32.partialorder %v158_v26, 0.0  ;;  %v164_v28 = vmul.f32 0.2, %v158_v26 }
 0x10b   :  { %v160_v29 = vpop.f32.mrf.mxu0 }
 0x10c   :  { %v165_v30 = vsel %vm163_vm1, %v158_v26, %v164_v28 }
 0x10d   :  { %v741_v31 = vpop.f32.mrf.mxu0  ;;  %v166_v32 = vpack.c.bf16 %v165_v30, %v165_v30 }
 0x10f   :  { %759 = vmatmul.mubr.bf16.vlgmr.msra.gmra.mxu1 %v166_v32 }
 0x110   :  { %798 = vmatprep.mubr.msk.bf16.mxu1 %vm962_vm0, %v961_v0  ;;  %783 = vmatpush3.bf16.msra.mxu1 %v854_v35 }
 0x111   :  { %784 = vmatprep.subr.bf16.mxu1 %v961_v0 }
 0x114   :  { %785 = vmatpush3.bf16.msra.mxu1 %v855_v36 }
 0x115   :  { %786 = vmatprep.subr.bf16.mxu1 %v961_v0 }
 0x118   :  { %787 = vmatpush3.bf16.msra.mxu1 %v856_v37 }
 0x119   :  { %788 = vmatprep.subr.bf16.mxu1 %v961_v0 }
 0x11c   :  { %789 = vmatpush3.bf16.msra.mxu1 %v857_v38 }
 0x11d   :  { %790 = vmatprep.subr.bf16.mxu1 %v961_v0 }
 0x120   :  { %791 = vmatpush3.bf16.msra.mxu1 %v858_v39 }
 0x121   :  { %792 = vmatprep.subr.bf16.mxu1 %v961_v0 }
 0x124   :  { %793 = vmatpush3.bf16.msra.mxu1 %v859_v40 }
 0x125   :  { %794 = vmatprep.subr.bf16.mxu1 %v961_v0 }
 0x128   :  { %795 = vmatpush3.bf16.msra.mxu1 %v860_v50 }
 0x129   :  { %796 = vmatprep.subr.bf16.mxu1 %v961_v0 }
 0x12c   :  { %797 = vmatpush3.bf16.msra.mxu1 %v861_v51 }
 0x1cf   :  { %v270_v42 = vpop.f32.mrf.mxu1 }
 0x1d0   :  { %v271_v43 = vadd.f32 %v641_v41, %v270_v42 }
 0x1d1   :  { %v760_v44 = vpop.f32.mrf.mxu1 }
 0x1d2   :  { %vm276_vm2 = vcmp.gt.f32.partialorder %v271_v43, 0.0  ;;  %v277_v45 = vmul.f32 0.2, %v271_v43 }
 0x1d3   :  { %v273_v46 = vpop.f32.mrf.mxu1 }
 0x1d4   :  { %v278_v47 = vsel %vm276_vm2, %v271_v43, %v277_v45 }
 0x1d5   :  { %v279_v48 = vpack.c.bf16 %v278_v47, %v278_v47  ;;  %v761_v49 = vpop.f32.mrf.mxu1 }
 0x1d7   :  { %779 = vmatmul.mubr.bf16.vlgmr.msra.gmra.mxu0 %v279_v48 }
 0x1d8   :  { %818 = vmatprep.mubr.msk.bf16.mxu0 %vm962_vm0, %v961_v0  ;;  %803 = vmatpush3.bf16.msra.mxu0 %v862_v52 }
 0x1d9   :  { %804 = vmatprep.subr.bf16.mxu0 %v961_v0 }
 0x1dc   :  { %805 = vmatpush3.bf16.msra.mxu0 %v863_v53 }
 0x1dd   :  { %806 = vmatprep.subr.bf16.mxu0 %v961_v0 }
 0x1e0   :  { %807 = vmatpush3.bf16.msra.mxu0 %v864_v54 }
 0x1e1   :  { %808 = vmatprep.subr.bf16.mxu0 %v961_v0 }
 0x1e4   :  { %809 = vmatpush3.bf16.msra.mxu0 %v865_v55 }
 0x1e5   :  { %810 = vmatprep.subr.bf16.mxu0 %v961_v0 }
 0x1e8   :  { %811 = vmatpush3.bf16.msra.mxu0 %v866_v56 }
 0x1e9   :  { %812 = vmatprep.subr.bf16.mxu0 %v961_v0 }
 0x1ec   :  { %813 = vmatpush3.bf16.msra.mxu0 %v867_v57 }
 0x1ed   :  { %814 = vmatprep.subr.bf16.mxu0 %v961_v0 }
 0x1f0   :  { %815 = vmatpush3.bf16.msra.mxu0 %v868_v4 }
 0x1f1   :  { %816 = vmatprep.subr.bf16.mxu0 %v961_v0 }
 0x1f4   :  { %817 = vmatpush3.bf16.msra.mxu0 %v869_v5 }
 0x297   :  { %v383_v59 = vpop.f32.mrf.mxu0 }
 0x298   :  { %v384_v60 = vadd.f32 %v650_v58, %v383_v59 }
 0x299   :  { %v780_v61 = vpop.f32.mrf.mxu0 }
 0x29a   :  { %vm389_vm3 = vcmp.gt.f32.partialorder %v384_v60, 0.0  ;;  %v390_v62 = vmul.f32 0.2, %v384_v60 }
 0x29b   :  { %v386_v63 = vpop.f32.mrf.mxu0 }
 0x29c   :  { %v391_v1 = vsel %vm389_vm3, %v384_v60, %v390_v62 }
 0x29d   :  { %v392_v2 = vpack.c.bf16 %v391_v1, %v391_v1  ;;  %v781_v3 = vpop.f32.mrf.mxu0 }
 0x29f   :  { %799 = vmatmul.mubr.bf16.vlgmr.msra.gmra.mxu1 %v392_v2 }
 0x35f   :  { %v496_v7 = vpop.f32.mrf.mxu1 }
 0x360   :  { %v497_v8 = vadd.f32 %v659_v6, %v496_v7 }
 0x361   :  { %v800_v9 = vpop.f32.mrf.mxu1 }
 0x362   :  { %vm502_vm4 = vcmp.gt.f32.partialorder %v497_v8, 0.0  ;;  %v503_v10 = vmul.f32 0.2, %v497_v8 }
 0x363   :  { %v499_v11 = vpop.f32.mrf.mxu1 }
 0x364   :  { %v504_v12 = vsel %vm502_vm4, %v497_v8, %v503_v10 }
 0x365   :  { %v505_v13 = vpack.c.bf16 %v504_v12, %v504_v12  ;;  %v801_v14 = vpop.f32.mrf.mxu1 }
 0x367   :  { %819 = vmatmul.mubr.bf16.vlgmr.msra.gmra.mxu0 %v505_v13 }
 0x427   :  { %v609_v16 = vpop.f32.mrf.mxu0 }
 0x428   :  { %v610_v17 = vadd.f32 %v668_v15, %v609_v16 }
 0x429   :  { %v820_v0 = vpop.f32.mrf.mxu0 }
 0x42a   :  { %615 = vst [vmem:[#allocation8] sm:$0xff] %v610_v17 }
 0x42b   :  { %v612_v18 = vpop.f32.mrf.mxu0 }
 0x42c   :  { %941 = shalt.err (!%p938_p5)
}
 0x42d   :  { %625 = dma.vmem_to_hbm [thread:$0]  %s623_s2, 128, %s1049_s3, [#allocation4]   ;;  %v821_v19 = vpop.f32.mrf.mxu0 }
 0x42e   :  { %954 = dma.done.wait [#allocation4], 128  }
 0x42f   :  { %955 = vsyncadd [#allocation4], 4294967168 }
 0x430   :  { %629 = vsyncpa [#allocation3], 1 }
 0x431   :  { %630 = vsyncpa [#allocation6], 1 }
 0x432   :  { %631 = vsyncpa [#allocation4], 1 }

</bundles_post_ra>
